<compile_context>
chip_gen: v5e
topology: v5e:2x2
jax: 0.10.0
libtpu: 0.0.40
codegen_flags: <defaults>
</compile_context>

<pallas_src>
import functools

import jax
import jax.numpy as jnp
from jax.experimental import pallas as pl
from jax.experimental.pallas import tpu as pltpu


def _round_up(x, m):
    return (x + m - 1) // m * m


def _cdiv(a, b):
    return (a + b - 1) // b


def _pick_gate_tile(h_pad, max_tile):
    """Largest multiple of 128 <= max_tile that divides h_pad (h_pad % 128 == 0)."""
    t = max(128, (min(h_pad, max_tile) // 128) * 128)
    while h_pad % t:
        t -= 128
    return t


def _lstm_cell_kernel(x_ref, h_ref, c_ref, wx_ref, wh_ref, b_ref,
                      h_out_ref, c_out_ref, *, th):
    # Two MXU dots (same FLOPs as the fused [x|h] dot, but no per-step concat/pad
    # round-trip in HBM). Accumulation is f32 regardless of operand dtype.
    gates = (
        jnp.dot(x_ref[...], wx_ref[...], preferred_element_type=jnp.float32)
        + jnp.dot(h_ref[...], wh_ref[...], preferred_element_type=jnp.float32)
        + b_ref[...]
    )

    # Lane-aligned gate blocks (th is a multiple of 128 -> unmasked vector slices).
    i_pre = gates[:, 0 * th:1 * th]
    f_pre = gates[:, 1 * th:2 * th]
    g_pre = gates[:, 2 * th:3 * th]
    o_pre = gates[:, 3 * th:4 * th]

    # sigmoid(x) = 0.5*tanh(0.5*x) + 0.5 : one EUP op per element (vs exp + divide).
    # Note: 5 tanh per output element -> EUP is the compute ceiling once weights are
    # bf16/resident; keep block_b modest so the MXU/DMA fully hide the EUP tail.
    i_g = 0.5 * jnp.tanh(0.5 * i_pre) + 0.5
    f_g = 0.5 * jnp.tanh(0.5 * f_pre) + 0.5
    o_g = 0.5 * jnp.tanh(0.5 * o_pre) + 0.5
    g_g = jnp.tanh(g_pre)

    c_new = f_g * c_ref[...] + i_g * g_g            # f32 cell-state math
    h_out_ref[...] = (o_g * jnp.tanh(c_new)).astype(h_out_ref.dtype)
    # Cell state stays f32 across steps. (On v5e, storing c in bf16 would relieve the
    # single vst slot if long-horizon accuracy allows.)
    c_out_ref[...] = c_new


@functools.partial(
    jax.jit,
    static_argnames=("n_in", "n_units", "in_pad", "h_pad", "th", "block_b",
                     "compute_dtype", "single_buffer_weights"))
def _lstm_step(x, h_state, c_state, wx, wh, bias, *, n_in, n_units, in_pad,
               h_pad, th, block_b, compute_dtype, single_buffer_weights):
    """One LSTMCell step on padded, persistent state.

    x:        (B, n_in)               caller dtype
    h_state:  (b_pad, h_pad)          compute_dtype (padded, carried across steps)
    c_state:  (b_pad, h_pad)          f32           (padded, carried across steps)
    wx:       (in_pad, n_tiles*4*th)  compute_dtype (pre-transposed, gate-tiled)
    wh:       (h_pad,  n_tiles*4*th)  compute_dtype
    bias:     (1,      n_tiles*4*th)  f32 (b_ih + b_hh)
    Returns (h_state_new, c_state_new, h_view) with h_view = (B, n_units) in x.dtype.
    """
    B = x.shape[0]
    b_pad = h_state.shape[0]
    n_tiles = h_pad // th
    grid_b = b_pad // block_b

    # Only x needs per-step padding (small); h/c already live in the padded layout.
    x_p = jnp.pad(x.astype(compute_dtype), ((0, b_pad - B), (0, in_pad - n_in)))

    resident = single_buffer_weights and n_tiles == 1
    if resident:
        # Constant-index resident weight/bias blocks: one VMEM copy instead of two.
        w_kwargs = dict(pipeline_mode=pl.Buffered(1))
    else:
        w_kwargs = {}

    in_specs = [
        pl.BlockSpec((block_b, in_pad), lambda j, i: (i, 0)),                  # x
        pl.BlockSpec((block_b, h_pad), lambda j, i: (i, 0)),                   # h (full K)
        pl.BlockSpec((block_b, th), lambda j, i: (i, j)),                      # c tile
        pl.BlockSpec((in_pad, 4 * th), lambda j, i: (0, j), **w_kwargs),       # Wx tile
        pl.BlockSpec((h_pad, 4 * th), lambda j, i: (0, j), **w_kwargs),        # Wh tile
        pl.BlockSpec((1, 4 * th), lambda j, i: (0, j), **w_kwargs),            # bias tile
    ]
    out_specs = (
        pl.BlockSpec((block_b, th), lambda j, i: (i, j)),                      # h_new
        pl.BlockSpec((block_b, th), lambda j, i: (i, j)),                      # c_new (f32)
    )

    # Explicit scoped-VMEM budget sized from the real block working set (defaults of
    # ~16/32 MiB would reject resident weights for large n_units).
    cb = jnp.dtype(compute_dtype).itemsize
    wbuf = 1 if resident else 2
    vmem_bytes = (
        wbuf * (in_pad + h_pad) * 4 * th * cb       # Wx + Wh blocks
        + wbuf * 4 * th * 4                         # bias block (f32)
        + 2 * block_b * (in_pad + h_pad) * cb       # x + h blocks (double-buffered)
        + 2 * block_b * th * (4 + cb + 4)           # c in, h out, c out blocks
        + block_b * 4 * th * 4 * 4                  # f32 gates + activation temporaries
    )
    vmem_limit = min(int(vmem_bytes * 1.5) + (2 << 20), 128 << 20)

    h_out, c_out = pl.pallas_call(
        functools.partial(_lstm_cell_kernel, th=th),
        out_shape=(
            jax.ShapeDtypeStruct((b_pad, h_pad), compute_dtype),
            jax.ShapeDtypeStruct((b_pad, h_pad), jnp.float32),
        ),
        grid=(n_tiles, grid_b),
        in_specs=in_specs,
        out_specs=out_specs,
        input_output_aliases={2: 1},                # reuse the c_state buffer for c_out
        compiler_params=pltpu.CompilerParams(
            # Both grid axes are independent: megacore can shard the gate axis (halves
            # per-TC weight residency on v7x) and/or the batch axis.
            dimension_semantics=("parallel", "parallel"),
            vmem_limit_bytes=vmem_limit,
        ),
    )(x_p, h_state, c_state, wx, wh, bias)

    h_view = h_out[:B, :n_units].astype(x.dtype)
    return h_out, c_out, h_view


class Recurrent:
    """JAX/Pallas port of the PyTorch Recurrent module (stateful single-step LSTMCell).

    Matmul operands (x, h, W) use `compute_dtype` (default bfloat16: native MXU path,
    half the per-step weight HBM traffic); accumulation, bias, gate math and the
    carried cell state stay float32. Results therefore differ from the f32 PyTorch
    reference by bf16 input-quantization noise; pass compute_dtype=jnp.float32 for
    exact-precision behavior.
    """

    def __init__(self, n_in, n_units, key, compute_dtype=jnp.bfloat16,
                 max_gate_tile=512):
        self.n_in = n_in
        self.n_units = n_units
        self.compute_dtype = compute_dtype

        k = 1.0 / jnp.sqrt(jnp.float32(n_units))
        k1, k2, k3, k4 = jax.random.split(key, 4)
        # Same shapes/distribution as nn.LSTMCell (gate order i, f, g, o).
        self.w_ih = jax.random.uniform(k1, (4 * n_units, n_in), jnp.float32, -k, k)
        self.w_hh = jax.random.uniform(k2, (4 * n_units, n_units), jnp.float32, -k, k)
        self.b_ih = jax.random.uniform(k3, (4 * n_units,), jnp.float32, -k, k)
        self.b_hh = jax.random.uniform(k4, (4 * n_units,), jnp.float32, -k, k)
        # Learned initial states (zeros, like Parameter(torch.zeros(1, n_units))).
        self.initial_hidden = jnp.zeros((1, n_units), jnp.float32)
        self.initial_cell = jnp.zeros((1, n_units), jnp.float32)

        # --- Precompute padded, pre-transposed, gate-tiled parameters (done once). ---
        H = n_units
        self._in_pad = _round_up(max(n_in, 1), 128)
        self._h_pad = _round_up(H, 128)
        # TODO(synk): on v6e/v7x, rounding contraction / per-gate widths to 256 instead
        # of 128 fully feeds the 256x256 MXU when the natural pad lands on an odd 128.
        self._th = _pick_gate_tile(self._h_pad, max_gate_tile)
        n_tiles = self._h_pad // self._th

        # Column layout grouped by gate tile: [tile0: i f g o | tile1: i f g o | ...]
        # so one (.., 4*th) weight block per grid step covers all four gates of a tile.
        wx = jnp.zeros((self._in_pad, n_tiles * 4 * self._th), jnp.float32)
        wh = jnp.zeros((self._h_pad, n_tiles * 4 * self._th), jnp.float32)
        b = jnp.zeros((1, n_tiles * 4 * self._th), jnp.float32)
        for j in range(n_tiles):
            width = min(self._th, H - j * self._th)
            for g in range(4):
                rows = slice(g * H + j * self._th, g * H + j * self._th + width)
                col = (j * 4 + g) * self._th
                wx = wx.at[:n_in, col:col + width].set(self.w_ih[rows, :].T)
                wh = wh.at[:H, col:col + width].set(self.w_hh[rows, :].T)
                b = b.at[0, col:col + width].set(self.b_ih[rows] + self.b_hh[rows])
        self.wx = wx.astype(compute_dtype)      # (in_pad, n_tiles*4*th)
        self.wh = wh.astype(compute_dtype)      # (h_pad,  n_tiles*4*th)
        self.bias = b                           # (1, n_tiles*4*th) f32

        self._single_buffer_weights = hasattr(pl, "Buffered")
        self._h_state = None    # (b_pad, h_pad) compute_dtype, carried padded
        self._c_state = None    # (b_pad, h_pad) f32,           carried padded
        self._h_view = None
        self._block_b = None
        self._batch = None

    # --- public state views (sliced lazily; internal carry stays padded) ---
    @property
    def hidden_state(self):
        return self._h_view

    @property
    def cell_state(self):
        if self._c_state is None:
            return None
        return self._c_state[:self._batch, :self.n_units]

    def __call__(self, x):
        B = x.shape[0]
        if self._h_state is None:
            # Even batch split: padded batch divides exactly into <=256-row tiles.
            n_btiles = max(1, _cdiv(B, 256))
            self._block_b = _round_up(_cdiv(B, n_btiles), 8)
            b_pad = _round_up(B, self._block_b)
            self._batch = B
            h0 = jnp.zeros((b_pad, self._h_pad), jnp.float32)
            h0 = h0.at[:, :self.n_units].set(
                jnp.broadcast_to(self.initial_hidden, (b_pad, self.n_units)))
            c0 = jnp.zeros((b_pad, self._h_pad), jnp.float32)
            c0 = c0.at[:, :self.n_units].set(
                jnp.broadcast_to(self.initial_cell, (b_pad, self.n_units)))
            self._h_state = h0.astype(self.compute_dtype)
            self._c_state = c0
        if self._batch != B:
            raise ValueError(
                f"Batch size changed from {self._batch} to {B}; call reset() first.")

        step = functools.partial(
            _lstm_step,
            n_in=self.n_in, n_units=self.n_units, in_pad=self._in_pad,
            h_pad=self._h_pad, th=self._th, block_b=self._block_b,
            compute_dtype=self.compute_dtype)
        try:
            h_new, c_new, h_view = step(
                x, self._h_state, self._c_state, self.wx, self.wh, self.bias,
                single_buffer_weights=self._single_buffer_weights)
        except Exception:
            if not self._single_buffer_weights:
                raise
            # Fallback for Pallas versions without single-buffer pipeline_mode support.
            self._single_buffer_weights = False
            h_new, c_new, h_view = step(
                x, self._h_state, self._c_state, self.wx, self.wh, self.bias,
                single_buffer_weights=False)

        self._h_state, self._c_state, self._h_view = h_new, c_new, h_view
        return h_view

    def reset(self):
        self._h_state = None
        self._c_state = None
        self._h_view = None
        self._block_b = None
        self._batch = None


# ----------------------------- pure-JAX reference ------------------------------------
def _lstm_cell_ref(x, h, c, w_ih, w_hh, b_ih, b_hh):
    gates = x @ w_ih.T + b_ih + h @ w_hh.T + b_hh
    H = h.shape[-1]
    i = jax.nn.sigmoid(gates[:, 0 * H:1 * H])
    f = jax.nn.sigmoid(gates[:, 1 * H:2 * H])
    g = jnp.tanh(gates[:, 2 * H:3 * H])
    o = jax.nn.sigmoid(gates[:, 3 * H:4 * H])
    c_new = f * c + i * g
    h_new = o * jnp.tanh(c_new)
    return h_new, c_new


def _run_ref(model, xs):
    B = xs[0].shape[0]
    h = jnp.tile(model.initial_hidden, (B, 1))
    c = jnp.tile(model.initial_cell, (B, 1))
    outs = []
    for x in xs:
        h, c = _lstm_cell_ref(x, h, c, model.w_ih, model.w_hh, model.b_ih, model.b_hh)
        outs.append(h)
    return outs


if __name__ == "__main__":
    key = jax.random.PRNGKey(0)
    k_param, k_x1, k_x2, k_x3 = jax.random.split(key, 4)

    B, n_in, n_units = 2, 16, 32
    x1 = jax.random.normal(k_x1, (B, n_in), jnp.float32)
    x2 = jax.random.normal(k_x2, (B, n_in), jnp.float32)

    # --- f32 compute path: tight check against the pure-JAX reference. ---
    model_f32 = Recurrent(n_in, n_units, k_param, compute_dtype=jnp.float32)
    h1 = model_f32(x1)
    h2 = model_f32(x2)
    jax.block_until_ready(h2)
    h1_ref, h2_ref = _run_ref(model_f32, [x1, x2])
    assert jnp.allclose(h1, h1_ref, atol=1e-5, rtol=1e-5), "f32 step-1 mismatch"
    assert jnp.allclose(h2, h2_ref, atol=1e-5, rtol=1e-5), "f32 step-2 mismatch"

    # --- default bf16 operand path (f32 accumulate / f32 cell carry): loose tolerance. ---
    model_bf16 = Recurrent(n_in, n_units, k_param)   # compute_dtype=bfloat16
    hb1 = model_bf16(x1)
    hb2 = model_bf16(x2)
    jax.block_until_ready(hb2)
    assert jnp.allclose(hb1, h1_ref, atol=2e-2, rtol=2e-2), "bf16 step-1 mismatch"
    assert jnp.allclose(hb2, h2_ref, atol=2e-2, rtol=2e-2), "bf16 step-2 mismatch"

    # --- gate-tiled path (second grid dimension over the 4*H axis). ---
    Bt, n_in_t, n_units_t = 3, 8, 200     # h_pad=256, gate tile=128 -> 2 gate tiles
    model_tiled = Recurrent(n_in_t, n_units_t, k_param,
                            compute_dtype=jnp.float32, max_gate_tile=128)
    xt = jax.random.normal(k_x3, (Bt, n_in_t), jnp.float32)
    ht = model_tiled(xt)
    jax.block_until_ready(ht)
    ht_ref, = _run_ref(model_tiled, [xt])
    assert jnp.allclose(ht, ht_ref, atol=1e-5, rtol=1e-5), "tiled step mismatch"

    print("KERNEL_OK")
</pallas_src>

<mosaic_0001>
module attributes {stable_mosaic.version = 11 : i64} {
  func.func @_lstm_cell_kernel(%arg0: i32, %arg1: i32, %arg2: memref<8x128xf32, #tpu.memory_space<vmem>>, %arg3: memref<8x128xf32, #tpu.memory_space<vmem>>, %arg4: memref<8x128xf32, #tpu.memory_space<vmem>>, %arg5: memref<128x512xf32, #tpu.memory_space<vmem>>, %arg6: memref<128x512xf32, #tpu.memory_space<vmem>>, %arg7: memref<1x512xf32, #tpu.memory_space<vmem>>, %arg8: memref<8x128xf32, #tpu.memory_space<vmem>>, %arg9: memref<8x128xf32, #tpu.memory_space<vmem>>) attributes {dimension_semantics = [#tpu.dimension_semantics<parallel>, #tpu.dimension_semantics<parallel>], iteration_bounds = array<i64: 1, 1>, scalar_prefetch = 0 : i64, scratch_operands = 0 : i64, tpu.core_type = #tpu.core_type<tc>, window_params = [{transform_indices = @transform_0, window_bounds = array<i64: 8, 128>}, {transform_indices = @transform_1, window_bounds = array<i64: 8, 128>}, {transform_indices = @transform_2, window_bounds = array<i64: 8, 128>}, {pipeline_mode = #tpu.pipeline_mode<synchronous>, transform_indices = @transform_3, window_bounds = array<i64: 128, 512>}, {pipeline_mode = #tpu.pipeline_mode<synchronous>, transform_indices = @transform_4, window_bounds = array<i64: 128, 512>}, {pipeline_mode = #tpu.pipeline_mode<synchronous>, transform_indices = @transform_5, window_bounds = array<i64: 1, 512>}, {transform_indices = @transform_6, window_bounds = array<i64: 8, 128>}, {transform_indices = @transform_7, window_bounds = array<i64: 8, 128>}]} {
    %c0 = arith.constant 0 : index
    %c0_0 = arith.constant 0 : index
    %0 = vector.load %arg2[%c0, %c0_0] : memref<8x128xf32, #tpu.memory_space<vmem>>, vector<8x128xf32>
    %c0_1 = arith.constant 0 : index
    %c0_2 = arith.constant 0 : index
    %1 = vector.load %arg5[%c0_1, %c0_2] : memref<128x512xf32, #tpu.memory_space<vmem>>, vector<128x512xf32>
    %cst = arith.constant dense<0.000000e+00> : vector<8x512xf32>
    %2 = tpu.matmul %0, %1, %cst {dimension_numbers = #tpu.dot_dimension_numbers<[1], [0], [0], [1], [0, 0, 1, 1], [], []>} : vector<8x128xf32>, vector<128x512xf32>, vector<8x512xf32> -> vector<8x512xf32>
    %c0_3 = arith.constant 0 : index
    %c0_4 = arith.constant 0 : index
    %3 = vector.load %arg3[%c0_3, %c0_4] : memref<8x128xf32, #tpu.memory_space<vmem>>, vector<8x128xf32>
    %c0_5 = arith.constant 0 : index
    %c0_6 = arith.constant 0 : index
    %4 = vector.load %arg6[%c0_5, %c0_6] : memref<128x512xf32, #tpu.memory_space<vmem>>, vector<128x512xf32>
    %cst_7 = arith.constant dense<0.000000e+00> : vector<8x512xf32>
    %5 = tpu.matmul %3, %4, %cst_7 {dimension_numbers = #tpu.dot_dimension_numbers<[1], [0], [0], [1], [0, 0, 1, 1], [], []>} : vector<8x128xf32>, vector<128x512xf32>, vector<8x512xf32> -> vector<8x512xf32>
    %6 = arith.addf %2, %5 : vector<8x512xf32>
    %c0_8 = arith.constant 0 : index
    %c0_9 = arith.constant 0 : index
    %7 = vector.load %arg7[%c0_8, %c0_9] : memref<1x512xf32, #tpu.memory_space<vmem>>, vector<1x512xf32>
    %8 = vector.broadcast %7 : vector<1x512xf32> to vector<8x512xf32>
    %9 = arith.addf %6, %8 : vector<8x512xf32>
    %10 = vector.extract_strided_slice %9 {offsets = [0, 0], sizes = [8, 128], strides = [1, 1]} : vector<8x512xf32> to vector<8x128xf32>
    %11 = vector.extract_strided_slice %9 {offsets = [0, 128], sizes = [8, 128], strides = [1, 1]} : vector<8x512xf32> to vector<8x128xf32>
    %12 = vector.extract_strided_slice %9 {offsets = [0, 256], sizes = [8, 128], strides = [1, 1]} : vector<8x512xf32> to vector<8x128xf32>
    %13 = vector.extract_strided_slice %9 {offsets = [0, 384], sizes = [8, 128], strides = [1, 1]} : vector<8x512xf32> to vector<8x128xf32>
    %cst_10 = arith.constant 5.000000e-01 : f32
    %14 = vector.broadcast %cst_10 : f32 to vector<8x128xf32>
    %15 = arith.mulf %14, %10 : vector<8x128xf32>
    %16 = math.tanh %15 : vector<8x128xf32>
    %cst_11 = arith.constant 5.000000e-01 : f32
    %17 = vector.broadcast %cst_11 : f32 to vector<8x128xf32>
    %18 = arith.mulf %17, %16 : vector<8x128xf32>
    %cst_12 = arith.constant 5.000000e-01 : f32
    %19 = vector.broadcast %cst_12 : f32 to vector<8x128xf32>
    %20 = arith.addf %18, %19 : vector<8x128xf32>
    %cst_13 = arith.constant 5.000000e-01 : f32
    %21 = vector.broadcast %cst_13 : f32 to vector<8x128xf32>
    %22 = arith.mulf %21, %11 : vector<8x128xf32>
    %23 = math.tanh %22 : vector<8x128xf32>
    %cst_14 = arith.constant 5.000000e-01 : f32
    %24 = vector.broadcast %cst_14 : f32 to vector<8x128xf32>
    %25 = arith.mulf %24, %23 : vector<8x128xf32>
    %cst_15 = arith.constant 5.000000e-01 : f32
    %26 = vector.broadcast %cst_15 : f32 to vector<8x128xf32>
    %27 = arith.addf %25, %26 : vector<8x128xf32>
    %cst_16 = arith.constant 5.000000e-01 : f32
    %28 = vector.broadcast %cst_16 : f32 to vector<8x128xf32>
    %29 = arith.mulf %28, %13 : vector<8x128xf32>
    %30 = math.tanh %29 : vector<8x128xf32>
    %cst_17 = arith.constant 5.000000e-01 : f32
    %31 = vector.broadcast %cst_17 : f32 to vector<8x128xf32>
    %32 = arith.mulf %31, %30 : vector<8x128xf32>
    %cst_18 = arith.constant 5.000000e-01 : f32
    %33 = vector.broadcast %cst_18 : f32 to vector<8x128xf32>
    %34 = arith.addf %32, %33 : vector<8x128xf32>
    %35 = math.tanh %12 : vector<8x128xf32>
    %c0_19 = arith.constant 0 : index
    %c0_20 = arith.constant 0 : index
    %36 = vector.load %arg4[%c0_19, %c0_20] : memref<8x128xf32, #tpu.memory_space<vmem>>, vector<8x128xf32>
    %37 = arith.mulf %27, %36 : vector<8x128xf32>
    %38 = arith.mulf %20, %35 : vector<8x128xf32>
    %39 = arith.addf %37, %38 : vector<8x128xf32>
    %40 = math.tanh %39 : vector<8x128xf32>
    %41 = arith.mulf %34, %40 : vector<8x128xf32>
    %c0_21 = arith.constant 0 : index
    %c0_22 = arith.constant 0 : index
    %42 = vector.load %arg8[%c0_21, %c0_22] : memref<8x128xf32, #tpu.memory_space<vmem>>, vector<8x128xf32>
    tpu.vector_store %arg8[%c0_21, %c0_22], %41 {strides = array<i32>} : memref<8x128xf32, #tpu.memory_space<vmem>>, vector<8x128xf32>,
    %c0_23 = arith.constant 0 : index
    %c0_24 = arith.constant 0 : index
    %43 = vector.load %arg9[%c0_23, %c0_24] : memref<8x128xf32, #tpu.memory_space<vmem>>, vector<8x128xf32>
    tpu.vector_store %arg9[%c0_23, %c0_24], %39 {strides = array<i32>} : memref<8x128xf32, #tpu.memory_space<vmem>>, vector<8x128xf32>,
    return
  }
  func.func @transform_0(%arg0: i32, %arg1: i32) -> (i32, i32) {
    %c0_i32 = arith.constant 0 : i32
    %c0_i32_0 = arith.constant 0 : i32
    return %arg1, %c0_i32 : i32, i32
  }
  func.func @transform_1(%arg0: i32, %arg1: i32) -> (i32, i32) {
    %c0_i32 = arith.constant 0 : i32
    %c0_i32_0 = arith.constant 0 : i32
    return %arg1, %c0_i32 : i32, i32
  }
  func.func @transform_2(%arg0: i32, %arg1: i32) -> (i32, i32) {
    %c0_i32 = arith.constant 0 : i32
    return %arg1, %arg0 : i32, i32
  }
  func.func @transform_3(%arg0: i32, %arg1: i32) -> (i32, i32) {
    %c0_i32 = arith.constant 0 : i32
    %c0_i32_0 = arith.constant 0 : i32
    return %c0_i32, %arg0 : i32, i32
  }
  func.func @transform_4(%arg0: i32, %arg1: i32) -> (i32, i32) {
    %c0_i32 = arith.constant 0 : i32
    %c0_i32_0 = arith.constant 0 : i32
    return %c0_i32, %arg0 : i32, i32
  }
  func.func @transform_5(%arg0: i32, %arg1: i32) -> (i32, i32) {
    %c0_i32 = arith.constant 0 : i32
    %c0_i32_0 = arith.constant 0 : i32
    return %c0_i32, %arg0 : i32, i32
  }
  func.func @transform_6(%arg0: i32, %arg1: i32) -> (i32, i32) {
    %c0_i32 = arith.constant 0 : i32
    return %arg1, %arg0 : i32, i32
  }
  func.func @transform_7(%arg0: i32, %arg1: i32) -> (i32, i32) {
    %c0_i32 = arith.constant 0 : i32
    return %arg1, %arg0 : i32, i32
  }
}

module attributes {stable_mosaic.version = 11 : i64} {
  func.func @_lstm_cell_kernel(%arg0: i32, %arg1: i32, %arg2: memref<8x128xf32, #tpu.memory_space<vmem>>, %arg3: memref<8x128xf32, #tpu.memory_space<vmem>>, %arg4: memref<8x128xf32, #tpu.memory_space<vmem>>, %arg5: memref<128x512xf32, #tpu.memory_space<vmem>>, %arg6: memref<128x512xf32, #tpu.memory_space<vmem>>, %arg7: memref<1x512xf32, #tpu.memory_space<vmem>>, %arg8: memref<8x128xf32, #tpu.memory_space<vmem>>, %arg9: memref<8x128xf32, #tpu.memory_space<vmem>>) attributes {dimension_semantics = [#tpu.dimension_semantics<parallel>, #tpu.dimension_semantics<parallel>], iteration_bounds = array<i64: 1, 1>, scalar_prefetch = 0 : i64, scratch_operands = 0 : i64, tpu.core_type = #tpu.core_type<tc>, window_params = [{transform_indices = @transform_0, window_bounds = array<i64: 8, 128>}, {transform_indices = @transform_1, window_bounds = array<i64: 8, 128>}, {transform_indices = @transform_2, window_bounds = array<i64: 8, 128>}, {transform_indices = @transform_3, window_bounds = array<i64: 128, 512>}, {transform_indices = @transform_4, window_bounds = array<i64: 128, 512>}, {transform_indices = @transform_5, window_bounds = array<i64: 1, 512>}, {transform_indices = @transform_6, window_bounds = array<i64: 8, 128>}, {transform_indices = @transform_7, window_bounds = array<i64: 8, 128>}]} {
    %c0 = arith.constant 0 : index
    %c0_0 = arith.constant 0 : index
    %0 = vector.load %arg2[%c0, %c0_0] : memref<8x128xf32, #tpu.memory_space<vmem>>, vector<8x128xf32>
    %c0_1 = arith.constant 0 : index
    %c0_2 = arith.constant 0 : index
    %1 = vector.load %arg5[%c0_1, %c0_2] : memref<128x512xf32, #tpu.memory_space<vmem>>, vector<128x512xf32>
    %cst = arith.constant dense<0.000000e+00> : vector<8x512xf32>
    %2 = tpu.matmul %0, %1, %cst {dimension_numbers = #tpu.dot_dimension_numbers<[1], [0], [0], [1], [0, 0, 1, 1], [], []>} : vector<8x128xf32>, vector<128x512xf32>, vector<8x512xf32> -> vector<8x512xf32>
    %c0_3 = arith.constant 0 : index
    %c0_4 = arith.constant 0 : index
    %3 = vector.load %arg3[%c0_3, %c0_4] : memref<8x128xf32, #tpu.memory_space<vmem>>, vector<8x128xf32>
    %c0_5 = arith.constant 0 : index
    %c0_6 = arith.constant 0 : index
    %4 = vector.load %arg6[%c0_5, %c0_6] : memref<128x512xf32, #tpu.memory_space<vmem>>, vector<128x512xf32>
    %cst_7 = arith.constant dense<0.000000e+00> : vector<8x512xf32>
    %5 = tpu.matmul %3, %4, %cst_7 {dimension_numbers = #tpu.dot_dimension_numbers<[1], [0], [0], [1], [0, 0, 1, 1], [], []>} : vector<8x128xf32>, vector<128x512xf32>, vector<8x512xf32> -> vector<8x512xf32>
    %6 = arith.addf %2, %5 : vector<8x512xf32>
    %c0_8 = arith.constant 0 : index
    %c0_9 = arith.constant 0 : index
    %7 = vector.load %arg7[%c0_8, %c0_9] : memref<1x512xf32, #tpu.memory_space<vmem>>, vector<1x512xf32>
    %8 = vector.broadcast %7 : vector<1x512xf32> to vector<8x512xf32>
    %9 = arith.addf %6, %8 : vector<8x512xf32>
    %10 = vector.extract_strided_slice %9 {offsets = [0, 0], sizes = [8, 128], strides = [1, 1]} : vector<8x512xf32> to vector<8x128xf32>
    %11 = vector.extract_strided_slice %9 {offsets = [0, 128], sizes = [8, 128], strides = [1, 1]} : vector<8x512xf32> to vector<8x128xf32>
    %12 = vector.extract_strided_slice %9 {offsets = [0, 256], sizes = [8, 128], strides = [1, 1]} : vector<8x512xf32> to vector<8x128xf32>
    %13 = vector.extract_strided_slice %9 {offsets = [0, 384], sizes = [8, 128], strides = [1, 1]} : vector<8x512xf32> to vector<8x128xf32>
    %cst_10 = arith.constant 5.000000e-01 : f32
    %14 = vector.broadcast %cst_10 : f32 to vector<8x128xf32>
    %15 = arith.mulf %14, %10 : vector<8x128xf32>
    %16 = math.tanh %15 : vector<8x128xf32>
    %cst_11 = arith.constant 5.000000e-01 : f32
    %17 = vector.broadcast %cst_11 : f32 to vector<8x128xf32>
    %18 = arith.mulf %17, %16 : vector<8x128xf32>
    %cst_12 = arith.constant 5.000000e-01 : f32
    %19 = vector.broadcast %cst_12 : f32 to vector<8x128xf32>
    %20 = arith.addf %18, %19 : vector<8x128xf32>
    %cst_13 = arith.constant 5.000000e-01 : f32
    %21 = vector.broadcast %cst_13 : f32 to vector<8x128xf32>
    %22 = arith.mulf %21, %11 : vector<8x128xf32>
    %23 = math.tanh %22 : vector<8x128xf32>
    %cst_14 = arith.constant 5.000000e-01 : f32
    %24 = vector.broadcast %cst_14 : f32 to vector<8x128xf32>
    %25 = arith.mulf %24, %23 : vector<8x128xf32>
    %cst_15 = arith.constant 5.000000e-01 : f32
    %26 = vector.broadcast %cst_15 : f32 to vector<8x128xf32>
    %27 = arith.addf %25, %26 : vector<8x128xf32>
    %cst_16 = arith.constant 5.000000e-01 : f32
    %28 = vector.broadcast %cst_16 : f32 to vector<8x128xf32>
    %29 = arith.mulf %28, %13 : vector<8x128xf32>
    %30 = math.tanh %29 : vector<8x128xf32>
    %cst_17 = arith.constant 5.000000e-01 : f32
    %31 = vector.broadcast %cst_17 : f32 to vector<8x128xf32>
    %32 = arith.mulf %31, %30 : vector<8x128xf32>
    %cst_18 = arith.constant 5.000000e-01 : f32
    %33 = vector.broadcast %cst_18 : f32 to vector<8x128xf32>
    %34 = arith.addf %32, %33 : vector<8x128xf32>
    %35 = math.tanh %12 : vector<8x128xf32>
    %c0_19 = arith.constant 0 : index
    %c0_20 = arith.constant 0 : index
    %36 = vector.load %arg4[%c0_19, %c0_20] : memref<8x128xf32, #tpu.memory_space<vmem>>, vector<8x128xf32>
    %37 = arith.mulf %27, %36 : vector<8x128xf32>
    %38 = arith.mulf %20, %35 : vector<8x128xf32>
    %39 = arith.addf %37, %38 : vector<8x128xf32>
    %40 = math.tanh %39 : vector<8x128xf32>
    %41 = arith.mulf %34, %40 : vector<8x128xf32>
    %c0_21 = arith.constant 0 : index
    %c0_22 = arith.constant 0 : index
    %42 = vector.load %arg8[%c0_21, %c0_22] : memref<8x128xf32, #tpu.memory_space<vmem>>, vector<8x128xf32>
    tpu.vector_store %arg8[%c0_21, %c0_22], %41 {strides = array<i32>} : memref<8x128xf32, #tpu.memory_space<vmem>>, vector<8x128xf32>,
    %c0_23 = arith.constant 0 : index
    %c0_24 = arith.constant 0 : index
    %43 = vector.load %arg9[%c0_23, %c0_24] : memref<8x128xf32, #tpu.memory_space<vmem>>, vector<8x128xf32>
    tpu.vector_store %arg9[%c0_23, %c0_24], %39 {strides = array<i32>} : memref<8x128xf32, #tpu.memory_space<vmem>>, vector<8x128xf32>,
    return
  }
  func.func @transform_0(%arg0: i32, %arg1: i32) -> (i32, i32) {
    %c0_i32 = arith.constant 0 : i32
    %c0_i32_0 = arith.constant 0 : i32
    return %arg1, %c0_i32 : i32, i32
  }
  func.func @transform_1(%arg0: i32, %arg1: i32) -> (i32, i32) {
    %c0_i32 = arith.constant 0 : i32
    %c0_i32_0 = arith.constant 0 : i32
    return %arg1, %c0_i32 : i32, i32
  }
  func.func @transform_2(%arg0: i32, %arg1: i32) -> (i32, i32) {
    %c0_i32 = arith.constant 0 : i32
    return %arg1, %arg0 : i32, i32
  }
  func.func @transform_3(%arg0: i32, %arg1: i32) -> (i32, i32) {
    %c0_i32 = arith.constant 0 : i32
    %c0_i32_0 = arith.constant 0 : i32
    return %c0_i32, %arg0 : i32, i32
  }
  func.func @transform_4(%arg0: i32, %arg1: i32) -> (i32, i32) {
    %c0_i32 = arith.constant 0 : i32
    %c0_i32_0 = arith.constant 0 : i32
    return %c0_i32, %arg0 : i32, i32
  }
  func.func @transform_5(%arg0: i32, %arg1: i32) -> (i32, i32) {
    %c0_i32 = arith.constant 0 : i32
    %c0_i32_0 = arith.constant 0 : i32
    return %c0_i32, %arg0 : i32, i32
  }
  func.func @transform_6(%arg0: i32, %arg1: i32) -> (i32, i32) {
    %c0_i32 = arith.constant 0 : i32
    return %arg1, %arg0 : i32, i32
  }
  func.func @transform_7(%arg0: i32, %arg1: i32) -> (i32, i32) {
    %c0_i32 = arith.constant 0 : i32
    return %arg1, %arg0 : i32, i32
  }
}

</mosaic_0001>

<bundles_post_ra>
// kernel: _lstm_step.1
= control target key start
LH: loop header
LB: loop body
LE: loop exit
PB: predicated region body
PF: predicated region fallthrough
CT: control target
= control target key end

     0   :  { %13 = vsyncpa [#allocation3], 0  ;;  %s526_s0 = inlined_call_operand.vmem [shape: f32[8,128], index: 0, kind: input, shape index: {}]   ;;  %s527_s1 = inlined_call_operand.vmem [shape: f32[8,128], index: 1, kind: input, shape index: {}]   ;;  %s528_s2 = inlined_call_operand.vmem [shape: f32[8,128], index: 2, kind: input, shape index: {}, may-alias: {2,7}]   ;;  %s529_s3 = inlined_call_operand.hbm [shape: f32[128,512], index: 3, kind: input, shape index: {}]   ;;  %s530_s4 = inlined_call_operand.hbm [shape: f32[128,512], index: 4, kind: input, shape index: {}]   ;;  %s531_s5 = inlined_call_operand.vmem [shape: f32[1,512], index: 5, kind: input, shape index: {}]   ;;  %s532_s6 = inlined_call_operand.vmem [shape: f32[8,128], index: 6, kind: output, shape index: {0}]   ;;  %s533_s7 = inlined_call_operand.vmem [shape: f32[8,128], index: 7, kind: output, shape index: {1}, may-alias: {2,7}]  }
   0x1   :  { %s25_s26 = sshll.u32 %s529_s3, 4  ;;  %s26_s26 = int_to_ptr.hbm [resolvable:$true] %s25_s26 }
   0x2   :  { %14 = vsyncpa [#allocation5], 0  ;;  %s458_s27 = smov [#allocation2]   ;;  %s38_s8 = sshll.u32 %s530_s4, 4  ;;  %s39_s8 = int_to_ptr.hbm [resolvable:$true] %s38_s8 }
   0x3   :  { %s27_s28 = sshll.u32 %s458_s27, 4  ;;  %s459_s9 = smov 512   ;;  %s28_s28 = int_to_ptr.vmem [resolvable:$true] %s27_s28 }
   0x4   :  { %s460_s10 = smov 32   ;;  %s461_s11 = smov [#allocation4]  }
   0x5   :  { %33 = dma.hbm_to_vmem [thread:$0]  %s26_s26, 8192, %s28_s28, [#allocation3], %s459_s9, %s459_s9, %s460_s10  }
   0x6   :  { %s40_s12 = sshll.u32 %s461_s11, 4  ;;  %s41_s12 = int_to_ptr.vmem [resolvable:$true] %s40_s12 }
   0x7   :  { %46 = dma.hbm_to_vmem [thread:$0]  %s39_s8, 8192, %s41_s12, [#allocation5], %s459_s9, %s459_s9, %s460_s10  }
   0x8   :  { %454 = dma.done.wait [#allocation3], 8192  }
   0x9   :  { %455 = vsyncadd [#allocation3], 4294959104 }
   0xa   :  { %456 = dma.done.wait [#allocation5], 8192  }
   0xb   :  { %457 = vsyncadd [#allocation5], 4294959104  ;;  %v183_v0 = vld [vmem:[#allocation4 + $0x1e0] sm:$0xff]  ;;  %v184_v1 = vld [vmem:[#allocation4 + $0x1e8] sm:$0xff] }
   0xc   :  { %v185_v2 = vld [vmem:[#allocation4 + $0x1f0] sm:$0xff]  ;;  %187 = vmatpush.msra.mxu0 %v183_v0  ;;  %207 = vmatpush.msra.mxu1 %v184_v1  ;;  %v186_v3 = vld [vmem:[#allocation4 + $0x1f8] sm:$0xff]  ;;  %v179_v4 = vld [vmem:[#allocation4 + $0x1c0] sm:$0xff] }
   0xd   :  { %v180_v5 = vld [vmem:[#allocation4 + $0x1c8] sm:$0xff]  ;;  %227 = vmatpush.msra.mxu2 %v185_v2  ;;  %247 = vmatpush.msra.mxu3 %v186_v3  ;;  %v181_v6 = vld [vmem:[#allocation4 + $0x1d0] sm:$0xff]  ;;  %v182_v7 = vld [vmem:[#allocation4 + $0x1d8] sm:$0xff] }
   0xe   :  { %v175_v8 = vld [vmem:[#allocation4 + $0x1a0] sm:$0xff]  ;;  %188 = vmatpush.msra.mxu0 %v179_v4  ;;  %208 = vmatpush.msra.mxu1 %v180_v5  ;;  %v176_v9 = vld [vmem:[#allocation4 + $0x1a8] sm:$0xff]  ;;  %v177_v10 = vld [vmem:[#allocation4 + $0x1b0] sm:$0xff] }
   0xf   :  { %v178_v11 = vld [vmem:[#allocation4 + $0x1b8] sm:$0xff]  ;;  %228 = vmatpush.msra.mxu2 %v181_v6  ;;  %248 = vmatpush.msra.mxu3 %v182_v7  ;;  %v171_v12 = vld [vmem:[#allocation4 + $0x180] sm:$0xff]  ;;  %v172_v13 = vld [vmem:[#allocation4 + $0x188] sm:$0xff] }
  0x10   :  { %189 = vmatpush.msra.mxu0 %v175_v8  ;;  %209 = vmatpush.msra.mxu1 %v176_v9  ;;  %v173_v14 = vld [vmem:[#allocation4 + $0x190] sm:$0xff]  ;;  %v174_v15 = vld [vmem:[#allocation4 + $0x198] sm:$0xff]  ;;  %v167_v16 = vld [vmem:[#allocation4 + $0x160] sm:$0xff] }
  0x11   :  { %229 = vmatpush.msra.mxu2 %v177_v10  ;;  %249 = vmatpush.msra.mxu3 %v178_v11  ;;  %v168_v17 = vld [vmem:[#allocation4 + $0x168] sm:$0xff]  ;;  %v169_v18 = vld [vmem:[#allocation4 + $0x170] sm:$0xff]  ;;  %v170_v19 = vld [vmem:[#allocation4 + $0x178] sm:$0xff] }
  0x12   :  { %190 = vmatpush.msra.mxu0 %v171_v12  ;;  %210 = vmatpush.msra.mxu1 %v172_v13  ;;  %v163_v20 = vld [vmem:[#allocation4 + $0x140] sm:$0xff]  ;;  %v164_v21 = vld [vmem:[#allocation4 + $0x148] sm:$0xff]  ;;  %v165_v22 = vld [vmem:[#allocation4 + $0x150] sm:$0xff] }
  0x13   :  { %230 = vmatpush.msra.mxu2 %v173_v14  ;;  %250 = vmatpush.msra.mxu3 %v174_v15  ;;  %v166_v23 = vld [vmem:[#allocation4 + $0x158] sm:$0xff]  ;;  %v159_v24 = vld [vmem:[#allocation4 + $0x120] sm:$0xff]  ;;  %v160_v25 = vld [vmem:[#allocation4 + $0x128] sm:$0xff] }
  0x14   :  { %191 = vmatpush.msra.mxu0 %v167_v16  ;;  %211 = vmatpush.msra.mxu1 %v168_v17  ;;  %v161_v26 = vld [vmem:[#allocation4 + $0x130] sm:$0xff]  ;;  %v162_v27 = vld [vmem:[#allocation4 + $0x138] sm:$0xff]  ;;  %v155_v28 = vld [vmem:[#allocation4 + $0x100] sm:$0xff] }
  0x15   :  { %231 = vmatpush.msra.mxu2 %v169_v18  ;;  %251 = vmatpush.msra.mxu3 %v170_v19  ;;  %v156_v29 = vld [vmem:[#allocation4 + $0x108] sm:$0xff]  ;;  %v157_v30 = vld [vmem:[#allocation4 + $0x110] sm:$0xff]  ;;  %v158_v31 = vld [vmem:[#allocation4 + $0x118] sm:$0xff] }
  0x16   :  { %192 = vmatpush.msra.mxu0 %v163_v20  ;;  %212 = vmatpush.msra.mxu1 %v164_v21  ;;  %v151_v32 = vld [vmem:[#allocation4 + $0xe0] sm:$0xff]  ;;  %v152_v33 = vld [vmem:[#allocation4 + $0xe8] sm:$0xff]  ;;  %v153_v34 = vld [vmem:[#allocation4 + $0xf0] sm:$0xff] }
  0x17   :  { %232 = vmatpush.msra.mxu2 %v165_v22  ;;  %252 = vmatpush.msra.mxu3 %v166_v23  ;;  %v154_v35 = vld [vmem:[#allocation4 + $0xf8] sm:$0xff]  ;;  %v147_v36 = vld [vmem:[#allocation4 + $0xc0] sm:$0xff]  ;;  %v148_v37 = vld [vmem:[#allocation4 + $0xc8] sm:$0xff] }
  0x18   :  { %193 = vmatpush.msra.mxu0 %v159_v24  ;;  %213 = vmatpush.msra.mxu1 %v160_v25  ;;  %v149_v38 = vld [vmem:[#allocation4 + $0xd0] sm:$0xff]  ;;  %v150_v39 = vld [vmem:[#allocation4 + $0xd8] sm:$0xff]  ;;  %v143_v40 = vld [vmem:[#allocation4 + $0xa0] sm:$0xff] }
  0x19   :  { %233 = vmatpush.msra.mxu2 %v161_v26  ;;  %253 = vmatpush.msra.mxu3 %v162_v27  ;;  %v144_v41 = vld [vmem:[#allocation4 + $0xa8] sm:$0xff]  ;;  %v145_v42 = vld [vmem:[#allocation4 + $0xb0] sm:$0xff]  ;;  %v146_v43 = vld [vmem:[#allocation4 + $0xb8] sm:$0xff] }
  0x1a   :  { %194 = vmatpush.msra.mxu0 %v155_v28  ;;  %214 = vmatpush.msra.mxu1 %v156_v29  ;;  %v139_v44 = vld [vmem:[#allocation4 + $0x80] sm:$0xff]  ;;  %v140_v45 = vld [vmem:[#allocation4 + $0x88] sm:$0xff]  ;;  %v141_v46 = vld [vmem:[#allocation4 + $0x90] sm:$0xff] }
  0x1b   :  { %234 = vmatpush.msra.mxu2 %v157_v30  ;;  %254 = vmatpush.msra.mxu3 %v158_v31  ;;  %v142_v47 = vld [vmem:[#allocation4 + $0x98] sm:$0xff]  ;;  %v135_v48 = vld [vmem:[#allocation4 + $0x60] sm:$0xff]  ;;  %v136_v49 = vld [vmem:[#allocation4 + $0x68] sm:$0xff] }
  0x1c   :  { %195 = vmatpush.msra.mxu0 %v151_v32  ;;  %215 = vmatpush.msra.mxu1 %v152_v33  ;;  %v137_v50 = vld [vmem:[#allocation4 + $0x70] sm:$0xff]  ;;  %v138_v51 = vld [vmem:[#allocation4 + $0x78] sm:$0xff]  ;;  %v131_v52 = vld [vmem:[#allocation4 + $0x40] sm:$0xff] }
  0x1d   :  { %235 = vmatpush.msra.mxu2 %v153_v34  ;;  %255 = vmatpush.msra.mxu3 %v154_v35  ;;  %v132_v53 = vld [vmem:[#allocation4 + $0x48] sm:$0xff]  ;;  %v133_v54 = vld [vmem:[#allocation4 + $0x50] sm:$0xff]  ;;  %v134_v55 = vld [vmem:[#allocation4 + $0x58] sm:$0xff] }
  0x1e   :  { %196 = vmatpush.msra.mxu0 %v147_v36  ;;  %216 = vmatpush.msra.mxu1 %v148_v37  ;;  %v127_v56 = vld [vmem:[#allocation4 + $0x20] sm:$0xff]  ;;  %v128_v57 = vld [vmem:[#allocation4 + $0x28] sm:$0xff]  ;;  %v129_v58 = vld [vmem:[#allocation4 + $0x30] sm:$0xff] }
  0x1f   :  { %236 = vmatpush.msra.mxu2 %v149_v38  ;;  %256 = vmatpush.msra.mxu3 %v150_v39  ;;  %v130_v59 = vld [vmem:[#allocation4 + $0x38] sm:$0xff]  ;;  %v123_v60 = vld [vmem:[#allocation4] sm:$0xff]  ;;  %v124_v61 = vld [vmem:[#allocation4 + $0x8] sm:$0xff] }
  0x20   :  { %197 = vmatpush.msra.mxu0 %v143_v40  ;;  %217 = vmatpush.msra.mxu1 %v144_v41  ;;  %v125_v62 = vld [vmem:[#allocation4 + $0x10] sm:$0xff]  ;;  %v126_v63 = vld [vmem:[#allocation4 + $0x18] sm:$0xff]  ;;  %v118_v0 = vld [vmem:[#allocation2 + $0x1e0] sm:$0xff] }
  0x21   :  { %237 = vmatpush.msra.mxu2 %v145_v42  ;;  %257 = vmatpush.msra.mxu3 %v146_v43  ;;  %v119_v1 = vld [vmem:[#allocation2 + $0x1e8] sm:$0xff]  ;;  %v120_v2 = vld [vmem:[#allocation2 + $0x1f0] sm:$0xff]  ;;  %v121_v3 = vld [vmem:[#allocation2 + $0x1f8] sm:$0xff] }
  0x22   :  { %198 = vmatpush.msra.mxu0 %v139_v44  ;;  %218 = vmatpush.msra.mxu1 %v140_v45  ;;  %v114_v4 = vld [vmem:[#allocation2 + $0x1c0] sm:$0xff]  ;;  %v115_v5 = vld [vmem:[#allocation2 + $0x1c8] sm:$0xff]  ;;  %v116_v6 = vld [vmem:[#allocation2 + $0x1d0] sm:$0xff] }
  0x23   :  { %238 = vmatpush.msra.mxu2 %v141_v46  ;;  %258 = vmatpush.msra.mxu3 %v142_v47  ;;  %v117_v7 = vld [vmem:[#allocation2 + $0x1d8] sm:$0xff]  ;;  %v110_v8 = vld [vmem:[#allocation2 + $0x1a0] sm:$0xff]  ;;  %v111_v9 = vld [vmem:[#allocation2 + $0x1a8] sm:$0xff] }
  0x24   :  { %199 = vmatpush.msra.mxu0 %v135_v48  ;;  %219 = vmatpush.msra.mxu1 %v136_v49  ;;  %v112_v10 = vld [vmem:[#allocation2 + $0x1b0] sm:$0xff]  ;;  %v113_v11 = vld [vmem:[#allocation2 + $0x1b8] sm:$0xff]  ;;  %v106_v12 = vld [vmem:[#allocation2 + $0x180] sm:$0xff] }
  0x25   :  { %239 = vmatpush.msra.mxu2 %v137_v50  ;;  %259 = vmatpush.msra.mxu3 %v138_v51  ;;  %v107_v13 = vld [vmem:[#allocation2 + $0x188] sm:$0xff]  ;;  %v108_v14 = vld [vmem:[#allocation2 + $0x190] sm:$0xff]  ;;  %v109_v15 = vld [vmem:[#allocation2 + $0x198] sm:$0xff] }
  0x26   :  { %200 = vmatpush.msra.mxu0 %v131_v52  ;;  %220 = vmatpush.msra.mxu1 %v132_v53  ;;  %v102_v16 = vld [vmem:[#allocation2 + $0x160] sm:$0xff]  ;;  %v103_v17 = vld [vmem:[#allocation2 + $0x168] sm:$0xff]  ;;  %v104_v18 = vld [vmem:[#allocation2 + $0x170] sm:$0xff] }
  0x27   :  { %240 = vmatpush.msra.mxu2 %v133_v54  ;;  %260 = vmatpush.msra.mxu3 %v134_v55  ;;  %v105_v19 = vld [vmem:[#allocation2 + $0x178] sm:$0xff]  ;;  %v98_v20 = vld [vmem:[#allocation2 + $0x140] sm:$0xff]  ;;  %v99_v21 = vld [vmem:[#allocation2 + $0x148] sm:$0xff] }
  0x28   :  { %201 = vmatpush.msra.mxu0 %v127_v56  ;;  %221 = vmatpush.msra.mxu1 %v128_v57  ;;  %v100_v22 = vld [vmem:[#allocation2 + $0x150] sm:$0xff]  ;;  %v101_v23 = vld [vmem:[#allocation2 + $0x158] sm:$0xff]  ;;  %v94_v24 = vld [vmem:[#allocation2 + $0x120] sm:$0xff] }
  0x29   :  { %241 = vmatpush.msra.mxu2 %v129_v58  ;;  %261 = vmatpush.msra.mxu3 %v130_v59  ;;  %v95_v25 = vld [vmem:[#allocation2 + $0x128] sm:$0xff]  ;;  %v96_v26 = vld [vmem:[#allocation2 + $0x130] sm:$0xff]  ;;  %v97_v27 = vld [vmem:[#allocation2 + $0x138] sm:$0xff] }
  0x2a   :  { %202 = vmatpush.msra.mxu0 %v123_v60  ;;  %222 = vmatpush.msra.mxu1 %v124_v61  ;;  %v90_v28 = vld [vmem:[#allocation2 + $0x100] sm:$0xff]  ;;  %v91_v29 = vld [vmem:[#allocation2 + $0x108] sm:$0xff]  ;;  %v92_v30 = vld [vmem:[#allocation2 + $0x110] sm:$0xff] }
  0x2b   :  { %242 = vmatpush.msra.mxu2 %v125_v62  ;;  %262 = vmatpush.msra.mxu3 %v126_v63  ;;  %v93_v31 = vld [vmem:[#allocation2 + $0x118] sm:$0xff]  ;;  %v86_v32 = vld [vmem:[#allocation2 + $0xe0] sm:$0xff]  ;;  %v87_v33 = vld [vmem:[#allocation2 + $0xe8] sm:$0xff] }
  0x2c   :  { %267 = vmatpush.msrb.mxu0 %v118_v0  ;;  %287 = vmatpush.msrb.mxu1 %v119_v1  ;;  %v88_v34 = vld [vmem:[#allocation2 + $0xf0] sm:$0xff]  ;;  %v89_v35 = vld [vmem:[#allocation2 + $0xf8] sm:$0xff]  ;;  %v82_v36 = vld [vmem:[#allocation2 + $0xc0] sm:$0xff] }
  0x2d   :  { %307 = vmatpush.msrb.mxu2 %v120_v2  ;;  %327 = vmatpush.msrb.mxu3 %v121_v3  ;;  %v83_v37 = vld [vmem:[#allocation2 + $0xc8] sm:$0xff]  ;;  %v84_v38 = vld [vmem:[#allocation2 + $0xd0] sm:$0xff]  ;;  %v85_v39 = vld [vmem:[#allocation2 + $0xd8] sm:$0xff] }
  0x2e   :  { %268 = vmatpush.msrb.mxu0 %v114_v4  ;;  %288 = vmatpush.msrb.mxu1 %v115_v5  ;;  %v78_v40 = vld [vmem:[#allocation2 + $0xa0] sm:$0xff]  ;;  %v79_v41 = vld [vmem:[#allocation2 + $0xa8] sm:$0xff]  ;;  %v80_v42 = vld [vmem:[#allocation2 + $0xb0] sm:$0xff] }
  0x2f   :  { %308 = vmatpush.msrb.mxu2 %v116_v6  ;;  %328 = vmatpush.msrb.mxu3 %v117_v7  ;;  %v81_v43 = vld [vmem:[#allocation2 + $0xb8] sm:$0xff]  ;;  %v74_v44 = vld [vmem:[#allocation2 + $0x80] sm:$0xff]  ;;  %v75_v45 = vld [vmem:[#allocation2 + $0x88] sm:$0xff] }
  0x30   :  { %269 = vmatpush.msrb.mxu0 %v110_v8  ;;  %289 = vmatpush.msrb.mxu1 %v111_v9  ;;  %v76_v46 = vld [vmem:[#allocation2 + $0x90] sm:$0xff]  ;;  %v77_v47 = vld [vmem:[#allocation2 + $0x98] sm:$0xff]  ;;  %v122_v48 = vld [vmem:[%s527_s1] sm:$0xff] }
  0x31   :  { %309 = vmatpush.msrb.mxu2 %v112_v10  ;;  %329 = vmatpush.msrb.mxu3 %v113_v11  ;;  %v70_v49 = vld [vmem:[#allocation2 + $0x60] sm:$0xff]  ;;  %v71_v50 = vld [vmem:[#allocation2 + $0x68] sm:$0xff]  ;;  %v72_v51 = vld [vmem:[#allocation2 + $0x70] sm:$0xff] }
  0x32   :  { %270 = vmatpush.msrb.mxu0 %v106_v12  ;;  %290 = vmatpush.msrb.mxu1 %v107_v13  ;;  %v73_v52 = vld [vmem:[#allocation2 + $0x78] sm:$0xff]  ;;  %v66_v53 = vld [vmem:[#allocation2 + $0x40] sm:$0xff]  ;;  %v67_v54 = vld [vmem:[#allocation2 + $0x48] sm:$0xff] }
  0x33   :  { %310 = vmatpush.msrb.mxu2 %v108_v14  ;;  %330 = vmatpush.msrb.mxu3 %v109_v15  ;;  %v68_v55 = vld [vmem:[#allocation2 + $0x50] sm:$0xff]  ;;  %v69_v56 = vld [vmem:[#allocation2 + $0x58] sm:$0xff]  ;;  %v62_v57 = vld [vmem:[#allocation2 + $0x20] sm:$0xff] }
  0x34   :  { %271 = vmatpush.msrb.mxu0 %v102_v16  ;;  %291 = vmatpush.msrb.mxu1 %v103_v17  ;;  %v63_v58 = vld [vmem:[#allocation2 + $0x28] sm:$0xff]  ;;  %v64_v59 = vld [vmem:[#allocation2 + $0x30] sm:$0xff]  ;;  %v65_v60 = vld [vmem:[#allocation2 + $0x38] sm:$0xff] }
  0x35   :  { %311 = vmatpush.msrb.mxu2 %v104_v18  ;;  %331 = vmatpush.msrb.mxu3 %v105_v19  ;;  %v58_v61 = vld [vmem:[#allocation2] sm:$0xff]  ;;  %v59_v62 = vld [vmem:[#allocation2 + $0x8] sm:$0xff]  ;;  %v60_v63 = vld [vmem:[#allocation2 + $0x10] sm:$0xff] }
  0x36   :  { %272 = vmatpush.msrb.mxu0 %v98_v20  ;;  %292 = vmatpush.msrb.mxu1 %v99_v21  ;;  %v61_v0 = vld [vmem:[#allocation2 + $0x18] sm:$0xff]  ;;  %v57_v1 = vld [vmem:[%s526_s0] sm:$0xff] }
  0x37   :  { %312 = vmatpush.msrb.mxu2 %v100_v22  ;;  %332 = vmatpush.msrb.mxu3 %v101_v23  ;;  %v347_v4 = vld [vmem:[%s531_s5] sm:$0xf] }
  0x38   :  { %273 = vmatpush.msrb.mxu0 %v94_v24  ;;  %293 = vmatpush.msrb.mxu1 %v95_v25  ;;  %v349_v7 = vperm.slane %v347_v4, 0  ;;  %v350_v8 = vperm.slane %v347_v4, 1  ;;  %v351_v17 = vperm.slane %v347_v4, 2  ;;  %v352_v18 = vperm.slane %v347_v4, 3 }
  0x39   :  { %313 = vmatpush.msrb.mxu2 %v96_v26  ;;  %333 = vmatpush.msrb.mxu3 %v97_v27 }
  0x3a   :  { %274 = vmatpush.msrb.mxu0 %v90_v28  ;;  %294 = vmatpush.msrb.mxu1 %v91_v29 }
  0x3b   :  { %314 = vmatpush.msrb.mxu2 %v92_v30  ;;  %334 = vmatpush.msrb.mxu3 %v93_v31  ;;  %v374_v31 = vld [vmem:[%s528_s2] sm:$0xff] }
  0x3c   :  { %275 = vmatpush.msrb.mxu0 %v86_v32  ;;  %295 = vmatpush.msrb.mxu1 %v87_v33 }
  0x3d   :  { %315 = vmatpush.msrb.mxu2 %v88_v34  ;;  %335 = vmatpush.msrb.mxu3 %v89_v35 }
  0x3e   :  { %276 = vmatpush.msrb.mxu0 %v82_v36  ;;  %296 = vmatpush.msrb.mxu1 %v83_v37 }
  0x3f   :  { %316 = vmatpush.msrb.mxu2 %v84_v38  ;;  %336 = vmatpush.msrb.mxu3 %v85_v39 }
  0x40   :  { %277 = vmatpush.msrb.mxu0 %v78_v40  ;;  %297 = vmatpush.msrb.mxu1 %v79_v41 }
  0x41   :  { %317 = vmatpush.msrb.mxu2 %v80_v42  ;;  %337 = vmatpush.msrb.mxu3 %v81_v43 }
  0x42   :  { %278 = vmatpush.msrb.mxu0 %v74_v44  ;;  %298 = vmatpush.msrb.mxu1 %v75_v45 }
  0x43   :  { %318 = vmatpush.msrb.mxu2 %v76_v46  ;;  %338 = vmatpush.msrb.mxu3 %v77_v47 }
  0x44   :  { %203 = vmatmul.f32.vlgmr.msra.gmra.mxu0 %v122_v48  ;;  %223 = vmatmul.f32.vlgmr.msra.gmra.mxu1 %v122_v48 }
  0x45   :  { %243 = vmatmul.f32.vlgmr.msra.gmra.mxu2 %v122_v48  ;;  %263 = vmatmul.f32.vlgmr.msra.gmra.mxu3 %v122_v48 }
  0x46   :  { %279 = vmatpush.msrb.mxu0 %v70_v49  ;;  %299 = vmatpush.msrb.mxu1 %v71_v50 }
  0x47   :  { %319 = vmatpush.msrb.mxu2 %v72_v51  ;;  %339 = vmatpush.msrb.mxu3 %v73_v52 }
  0x48   :  { %280 = vmatpush.msrb.mxu0 %v66_v53  ;;  %300 = vmatpush.msrb.mxu1 %v67_v54 }
  0x49   :  { %320 = vmatpush.msrb.mxu2 %v68_v55  ;;  %340 = vmatpush.msrb.mxu3 %v69_v56 }
  0x4a   :  { %281 = vmatpush.msrb.mxu0 %v62_v57  ;;  %301 = vmatpush.msrb.mxu1 %v63_v58 }
  0x4b   :  { %321 = vmatpush.msrb.mxu2 %v64_v59  ;;  %341 = vmatpush.msrb.mxu3 %v65_v60 }
  0x4c   :  { %282 = vmatpush.msrb.mxu0 %v58_v61  ;;  %302 = vmatpush.msrb.mxu1 %v59_v62 }
  0x4d   :  { %322 = vmatpush.msrb.mxu2 %v60_v63  ;;  %342 = vmatpush.msrb.mxu3 %v61_v0 }
  0x4e   :  { %283 = vmatmul.f32.vlgmr.msrb.gmra.mxu0 %v57_v1  ;;  %303 = vmatmul.f32.vlgmr.msrb.gmra.mxu1 %v57_v1 }
  0x4f   :  { %323 = vmatmul.f32.vlgmr.msrb.gmra.mxu2 %v57_v1  ;;  %343 = vmatmul.f32.vlgmr.msrb.gmra.mxu3 %v57_v1 }
  0xc1   :  { %v204_v2 = vpop.f32.mrf.mxu0  ;;  %v224_v3 = vpop.f32.mrf.mxu1 }
  0xc8   :  { %v244_v5 = vpop.f32.mrf.mxu2  ;;  %v264_v6 = vpop.f32.mrf.mxu3 }
  0xcb   :  { %v284_v9 = vpop.f32.mrf.mxu0  ;;  %v304_v10 = vpop.f32.mrf.mxu1 }
  0xcc   :  { %v285_v11 = vadd.f32 %v284_v9, %v204_v2  ;;  %v305_v12 = vadd.f32 %v304_v10, %v224_v3 }
  0xce   :  { %v357_v13 = vadd.f32 %v349_v7, %v285_v11  ;;  %v358_v14 = vadd.f32 %v350_v8, %v305_v12 }
  0xd0   :  { %v361_v15 = vmul.f32 0.5, %v357_v13  ;;  %v365_v16 = vmul.f32 0.5, %v358_v14 }
  0xd2   :  { %396 = vtanh.f32 %v361_v15  ;;  %v324_v19 = vpop.f32.mrf.mxu2  ;;  %v344_v20 = vpop.f32.mrf.mxu3 }
  0xd3   :  { %398 = vtanh.f32 %v365_v16  ;;  %v325_v21 = vadd.f32 %v324_v19, %v244_v5  ;;  %v345_v22 = vadd.f32 %v344_v20, %v264_v6 }
  0xd5   :  { %v359_v23 = vadd.f32 %v351_v17, %v325_v21  ;;  %v360_v24 = vadd.f32 %v352_v18, %v345_v22 }
  0xd7   :  { %400 = vtanh.f32 %v359_v23  ;;  %v369_v25 = vmul.f32 0.5, %v360_v24 }
  0xd8   :  { %v397_v26 = vpop.eup %396 }
  0xd9   :  { %v399_v27 = vpop.eup %398  ;;  %v363_v28 = vmul.f32 0.5, %v397_v26  ;;  %402 = vtanh.f32 %v369_v25 }
  0xda   :  { %v367_v29 = vmul.f32 0.5, %v399_v27 }
  0xdb   :  { %v364_v30 = vadd.f32 0.5, %v363_v28 }
  0xdc   :  { %v368_v32 = vadd.f32 0.5, %v367_v29 }
  0xdd   :  { %v401_v33 = vpop.eup %400 }
  0xde   :  { %v375_v34 = vmul.f32 %v374_v31, %v368_v32  ;;  %v376_v35 = vmul.f32 %v401_v33, %v364_v30 }
  0xdf   :  { %v403_v36 = vpop.eup %402 }
  0xe0   :  { %v377_v37 = vadd.f32 %v376_v35, %v375_v34  ;;  %v371_v38 = vmul.f32 0.5, %v403_v36 }
  0xe2   :  { %404 = vtanh.f32 %v377_v37  ;;  %381 = vst [vmem:[%s533_s7] sm:$0xff] %v377_v37  ;;  %v372_v39 = vadd.f32 0.5, %v371_v38 }
  0xe8   :  { %v405_v40 = vpop.eup %404 }
  0xe9   :  { %v379_v41 = vmul.f32 %v405_v40, %v372_v39 }
  0xeb   :  { %380 = vst [vmem:[%s532_s6] sm:$0xff] %v379_v41 }
  0xec   :  { %390 = vsyncpa [#allocation3], 1 }
  0xed   :  { %391 = vsyncpa [#allocation5], 1 }

// kernel: _lstm_step.1
= control target key start
LH: loop header
LB: loop body
LE: loop exit
PB: predicated region body
PF: predicated region fallthrough
CT: control target
= control target key end

     0   :  { %13 = vsyncpa [#allocation3], 0  ;;  %s526_s0 = inlined_call_operand.vmem [shape: f32[8,128], index: 0, kind: input, shape index: {}]   ;;  %s527_s1 = inlined_call_operand.vmem [shape: f32[8,128], index: 1, kind: input, shape index: {}]   ;;  %s528_s2 = inlined_call_operand.vmem [shape: f32[8,128], index: 2, kind: input, shape index: {}, may-alias: {2,7}]   ;;  %s529_s3 = inlined_call_operand.hbm [shape: f32[128,512], index: 3, kind: input, shape index: {}]   ;;  %s530_s4 = inlined_call_operand.hbm [shape: f32[128,512], index: 4, kind: input, shape index: {}]   ;;  %s531_s5 = inlined_call_operand.vmem [shape: f32[1,512], index: 5, kind: input, shape index: {}]   ;;  %s532_s6 = inlined_call_operand.vmem [shape: f32[8,128], index: 6, kind: output, shape index: {0}]   ;;  %s533_s7 = inlined_call_operand.vmem [shape: f32[8,128], index: 7, kind: output, shape index: {1}, may-alias: {2,7}]  }
   0x1   :  { %s25_s26 = sshll.u32 %s529_s3, 4  ;;  %s26_s26 = int_to_ptr.hbm [resolvable:$true] %s25_s26 }
   0x2   :  { %14 = vsyncpa [#allocation5], 0  ;;  %s458_s27 = smov [#allocation2]   ;;  %s38_s8 = sshll.u32 %s530_s4, 4  ;;  %s39_s8 = int_to_ptr.hbm [resolvable:$true] %s38_s8 }
   0x3   :  { %s27_s28 = sshll.u32 %s458_s27, 4  ;;  %s459_s9 = smov 512   ;;  %s28_s28 = int_to_ptr.vmem [resolvable:$true] %s27_s28 }
   0x4   :  { %s460_s10 = smov 32   ;;  %s461_s11 = smov [#allocation4]  }
   0x5   :  { %33 = dma.hbm_to_vmem [thread:$0]  %s26_s26, 8192, %s28_s28, [#allocation3], %s459_s9, %s459_s9, %s460_s10  }
   0x6   :  { %s40_s12 = sshll.u32 %s461_s11, 4  ;;  %s41_s12 = int_to_ptr.vmem [resolvable:$true] %s40_s12 }
   0x7   :  { %46 = dma.hbm_to_vmem [thread:$0]  %s39_s8, 8192, %s41_s12, [#allocation5], %s459_s9, %s459_s9, %s460_s10  }
   0x8   :  { %454 = dma.done.wait [#allocation3], 8192  }
   0x9   :  { %455 = vsyncadd [#allocation3], 4294959104 }
   0xa   :  { %456 = dma.done.wait [#allocation5], 8192  }
   0xb   :  { %457 = vsyncadd [#allocation5], 4294959104  ;;  %v183_v0 = vld [vmem:[#allocation4 + $0x1e0] sm:$0xff]  ;;  %v184_v1 = vld [vmem:[#allocation4 + $0x1e8] sm:$0xff] }
   0xc   :  { %v185_v2 = vld [vmem:[#allocation4 + $0x1f0] sm:$0xff]  ;;  %187 = vmatpush.msra.mxu0 %v183_v0  ;;  %207 = vmatpush.msra.mxu1 %v184_v1  ;;  %v186_v3 = vld [vmem:[#allocation4 + $0x1f8] sm:$0xff]  ;;  %v179_v4 = vld [vmem:[#allocation4 + $0x1c0] sm:$0xff] }
   0xd   :  { %v180_v5 = vld [vmem:[#allocation4 + $0x1c8] sm:$0xff]  ;;  %227 = vmatpush.msra.mxu2 %v185_v2  ;;  %247 = vmatpush.msra.mxu3 %v186_v3  ;;  %v181_v6 = vld [vmem:[#allocation4 + $0x1d0] sm:$0xff]  ;;  %v182_v7 = vld [vmem:[#allocation4 + $0x1d8] sm:$0xff] }
   0xe   :  { %v175_v8 = vld [vmem:[#allocation4 + $0x1a0] sm:$0xff]  ;;  %188 = vmatpush.msra.mxu0 %v179_v4  ;;  %208 = vmatpush.msra.mxu1 %v180_v5  ;;  %v176_v9 = vld [vmem:[#allocation4 + $0x1a8] sm:$0xff]  ;;  %v177_v10 = vld [vmem:[#allocation4 + $0x1b0] sm:$0xff] }
   0xf   :  { %v178_v11 = vld [vmem:[#allocation4 + $0x1b8] sm:$0xff]  ;;  %228 = vmatpush.msra.mxu2 %v181_v6  ;;  %248 = vmatpush.msra.mxu3 %v182_v7  ;;  %v171_v12 = vld [vmem:[#allocation4 + $0x180] sm:$0xff]  ;;  %v172_v13 = vld [vmem:[#allocation4 + $0x188] sm:$0xff] }
  0x10   :  { %189 = vmatpush.msra.mxu0 %v175_v8  ;;  %209 = vmatpush.msra.mxu1 %v176_v9  ;;  %v173_v14 = vld [vmem:[#allocation4 + $0x190] sm:$0xff]  ;;  %v174_v15 = vld [vmem:[#allocation4 + $0x198] sm:$0xff]  ;;  %v167_v16 = vld [vmem:[#allocation4 + $0x160] sm:$0xff] }
  0x11   :  { %229 = vmatpush.msra.mxu2 %v177_v10  ;;  %249 = vmatpush.msra.mxu3 %v178_v11  ;;  %v168_v17 = vld [vmem:[#allocation4 + $0x168] sm:$0xff]  ;;  %v169_v18 = vld [vmem:[#allocation4 + $0x170] sm:$0xff]  ;;  %v170_v19 = vld [vmem:[#allocation4 + $0x178] sm:$0xff] }
  0x12   :  { %190 = vmatpush.msra.mxu0 %v171_v12  ;;  %210 = vmatpush.msra.mxu1 %v172_v13  ;;  %v163_v20 = vld [vmem:[#allocation4 + $0x140] sm:$0xff]  ;;  %v164_v21 = vld [vmem:[#allocation4 + $0x148] sm:$0xff]  ;;  %v165_v22 = vld [vmem:[#allocation4 + $0x150] sm:$0xff] }
  0x13   :  { %230 = vmatpush.msra.mxu2 %v173_v14  ;;  %250 = vmatpush.msra.mxu3 %v174_v15  ;;  %v166_v23 = vld [vmem:[#allocation4 + $0x158] sm:$0xff]  ;;  %v159_v24 = vld [vmem:[#allocation4 + $0x120] sm:$0xff]  ;;  %v160_v25 = vld [vmem:[#allocation4 + $0x128] sm:$0xff] }
  0x14   :  { %191 = vmatpush.msra.mxu0 %v167_v16  ;;  %211 = vmatpush.msra.mxu1 %v168_v17  ;;  %v161_v26 = vld [vmem:[#allocation4 + $0x130] sm:$0xff]  ;;  %v162_v27 = vld [vmem:[#allocation4 + $0x138] sm:$0xff]  ;;  %v155_v28 = vld [vmem:[#allocation4 + $0x100] sm:$0xff] }
  0x15   :  { %231 = vmatpush.msra.mxu2 %v169_v18  ;;  %251 = vmatpush.msra.mxu3 %v170_v19  ;;  %v156_v29 = vld [vmem:[#allocation4 + $0x108] sm:$0xff]  ;;  %v157_v30 = vld [vmem:[#allocation4 + $0x110] sm:$0xff]  ;;  %v158_v31 = vld [vmem:[#allocation4 + $0x118] sm:$0xff] }
  0x16   :  { %192 = vmatpush.msra.mxu0 %v163_v20  ;;  %212 = vmatpush.msra.mxu1 %v164_v21  ;;  %v151_v32 = vld [vmem:[#allocation4 + $0xe0] sm:$0xff]  ;;  %v152_v33 = vld [vmem:[#allocation4 + $0xe8] sm:$0xff]  ;;  %v153_v34 = vld [vmem:[#allocation4 + $0xf0] sm:$0xff] }
  0x17   :  { %232 = vmatpush.msra.mxu2 %v165_v22  ;;  %252 = vmatpush.msra.mxu3 %v166_v23  ;;  %v154_v35 = vld [vmem:[#allocation4 + $0xf8] sm:$0xff]  ;;  %v147_v36 = vld [vmem:[#allocation4 + $0xc0] sm:$0xff]  ;;  %v148_v37 = vld [vmem:[#allocation4 + $0xc8] sm:$0xff] }
  0x18   :  { %193 = vmatpush.msra.mxu0 %v159_v24  ;;  %213 = vmatpush.msra.mxu1 %v160_v25  ;;  %v149_v38 = vld [vmem:[#allocation4 + $0xd0] sm:$0xff]  ;;  %v150_v39 = vld [vmem:[#allocation4 + $0xd8] sm:$0xff]  ;;  %v143_v40 = vld [vmem:[#allocation4 + $0xa0] sm:$0xff] }
  0x19   :  { %233 = vmatpush.msra.mxu2 %v161_v26  ;;  %253 = vmatpush.msra.mxu3 %v162_v27  ;;  %v144_v41 = vld [vmem:[#allocation4 + $0xa8] sm:$0xff]  ;;  %v145_v42 = vld [vmem:[#allocation4 + $0xb0] sm:$0xff]  ;;  %v146_v43 = vld [vmem:[#allocation4 + $0xb8] sm:$0xff] }
  0x1a   :  { %194 = vmatpush.msra.mxu0 %v155_v28  ;;  %214 = vmatpush.msra.mxu1 %v156_v29  ;;  %v139_v44 = vld [vmem:[#allocation4 + $0x80] sm:$0xff]  ;;  %v140_v45 = vld [vmem:[#allocation4 + $0x88] sm:$0xff]  ;;  %v141_v46 = vld [vmem:[#allocation4 + $0x90] sm:$0xff] }
  0x1b   :  { %234 = vmatpush.msra.mxu2 %v157_v30  ;;  %254 = vmatpush.msra.mxu3 %v158_v31  ;;  %v142_v47 = vld [vmem:[#allocation4 + $0x98] sm:$0xff]  ;;  %v135_v48 = vld [vmem:[#allocation4 + $0x60] sm:$0xff]  ;;  %v136_v49 = vld [vmem:[#allocation4 + $0x68] sm:$0xff] }
  0x1c   :  { %195 = vmatpush.msra.mxu0 %v151_v32  ;;  %215 = vmatpush.msra.mxu1 %v152_v33  ;;  %v137_v50 = vld [vmem:[#allocation4 + $0x70] sm:$0xff]  ;;  %v138_v51 = vld [vmem:[#allocation4 + $0x78] sm:$0xff]  ;;  %v131_v52 = vld [vmem:[#allocation4 + $0x40] sm:$0xff] }
  0x1d   :  { %235 = vmatpush.msra.mxu2 %v153_v34  ;;  %255 = vmatpush.msra.mxu3 %v154_v35  ;;  %v132_v53 = vld [vmem:[#allocation4 + $0x48] sm:$0xff]  ;;  %v133_v54 = vld [vmem:[#allocation4 + $0x50] sm:$0xff]  ;;  %v134_v55 = vld [vmem:[#allocation4 + $0x58] sm:$0xff] }
  0x1e   :  { %196 = vmatpush.msra.mxu0 %v147_v36  ;;  %216 = vmatpush.msra.mxu1 %v148_v37  ;;  %v127_v56 = vld [vmem:[#allocation4 + $0x20] sm:$0xff]  ;;  %v128_v57 = vld [vmem:[#allocation4 + $0x28] sm:$0xff]  ;;  %v129_v58 = vld [vmem:[#allocation4 + $0x30] sm:$0xff] }
  0x1f   :  { %236 = vmatpush.msra.mxu2 %v149_v38  ;;  %256 = vmatpush.msra.mxu3 %v150_v39  ;;  %v130_v59 = vld [vmem:[#allocation4 + $0x38] sm:$0xff]  ;;  %v123_v60 = vld [vmem:[#allocation4] sm:$0xff]  ;;  %v124_v61 = vld [vmem:[#allocation4 + $0x8] sm:$0xff] }
  0x20   :  { %197 = vmatpush.msra.mxu0 %v143_v40  ;;  %217 = vmatpush.msra.mxu1 %v144_v41  ;;  %v125_v62 = vld [vmem:[#allocation4 + $0x10] sm:$0xff]  ;;  %v126_v63 = vld [vmem:[#allocation4 + $0x18] sm:$0xff]  ;;  %v118_v0 = vld [vmem:[#allocation2 + $0x1e0] sm:$0xff] }
  0x21   :  { %237 = vmatpush.msra.mxu2 %v145_v42  ;;  %257 = vmatpush.msra.mxu3 %v146_v43  ;;  %v119_v1 = vld [vmem:[#allocation2 + $0x1e8] sm:$0xff]  ;;  %v120_v2 = vld [vmem:[#allocation2 + $0x1f0] sm:$0xff]  ;;  %v121_v3 = vld [vmem:[#allocation2 + $0x1f8] sm:$0xff] }
  0x22   :  { %198 = vmatpush.msra.mxu0 %v139_v44  ;;  %218 = vmatpush.msra.mxu1 %v140_v45  ;;  %v114_v4 = vld [vmem:[#allocation2 + $0x1c0] sm:$0xff]  ;;  %v115_v5 = vld [vmem:[#allocation2 + $0x1c8] sm:$0xff]  ;;  %v116_v6 = vld [vmem:[#allocation2 + $0x1d0] sm:$0xff] }
  0x23   :  { %238 = vmatpush.msra.mxu2 %v141_v46  ;;  %258 = vmatpush.msra.mxu3 %v142_v47  ;;  %v117_v7 = vld [vmem:[#allocation2 + $0x1d8] sm:$0xff]  ;;  %v110_v8 = vld [vmem:[#allocation2 + $0x1a0] sm:$0xff]  ;;  %v111_v9 = vld [vmem:[#allocation2 + $0x1a8] sm:$0xff] }
  0x24   :  { %199 = vmatpush.msra.mxu0 %v135_v48  ;;  %219 = vmatpush.msra.mxu1 %v136_v49  ;;  %v112_v10 = vld [vmem:[#allocation2 + $0x1b0] sm:$0xff]  ;;  %v113_v11 = vld [vmem:[#allocation2 + $0x1b8] sm:$0xff]  ;;  %v106_v12 = vld [vmem:[#allocation2 + $0x180] sm:$0xff] }
  0x25   :  { %239 = vmatpush.msra.mxu2 %v137_v50  ;;  %259 = vmatpush.msra.mxu3 %v138_v51  ;;  %v107_v13 = vld [vmem:[#allocation2 + $0x188] sm:$0xff]  ;;  %v108_v14 = vld [vmem:[#allocation2 + $0x190] sm:$0xff]  ;;  %v109_v15 = vld [vmem:[#allocation2 + $0x198] sm:$0xff] }
  0x26   :  { %200 = vmatpush.msra.mxu0 %v131_v52  ;;  %220 = vmatpush.msra.mxu1 %v132_v53  ;;  %v102_v16 = vld [vmem:[#allocation2 + $0x160] sm:$0xff]  ;;  %v103_v17 = vld [vmem:[#allocation2 + $0x168] sm:$0xff]  ;;  %v104_v18 = vld [vmem:[#allocation2 + $0x170] sm:$0xff] }
  0x27   :  { %240 = vmatpush.msra.mxu2 %v133_v54  ;;  %260 = vmatpush.msra.mxu3 %v134_v55  ;;  %v105_v19 = vld [vmem:[#allocation2 + $0x178] sm:$0xff]  ;;  %v98_v20 = vld [vmem:[#allocation2 + $0x140] sm:$0xff]  ;;  %v99_v21 = vld [vmem:[#allocation2 + $0x148] sm:$0xff] }
  0x28   :  { %201 = vmatpush.msra.mxu0 %v127_v56  ;;  %221 = vmatpush.msra.mxu1 %v128_v57  ;;  %v100_v22 = vld [vmem:[#allocation2 + $0x150] sm:$0xff]  ;;  %v101_v23 = vld [vmem:[#allocation2 + $0x158] sm:$0xff]  ;;  %v94_v24 = vld [vmem:[#allocation2 + $0x120] sm:$0xff] }
  0x29   :  { %241 = vmatpush.msra.mxu2 %v129_v58  ;;  %261 = vmatpush.msra.mxu3 %v130_v59  ;;  %v95_v25 = vld [vmem:[#allocation2 + $0x128] sm:$0xff]  ;;  %v96_v26 = vld [vmem:[#allocation2 + $0x130] sm:$0xff]  ;;  %v97_v27 = vld [vmem:[#allocation2 + $0x138] sm:$0xff] }
  0x2a   :  { %202 = vmatpush.msra.mxu0 %v123_v60  ;;  %222 = vmatpush.msra.mxu1 %v124_v61  ;;  %v90_v28 = vld [vmem:[#allocation2 + $0x100] sm:$0xff]  ;;  %v91_v29 = vld [vmem:[#allocation2 + $0x108] sm:$0xff]  ;;  %v92_v30 = vld [vmem:[#allocation2 + $0x110] sm:$0xff] }
  0x2b   :  { %242 = vmatpush.msra.mxu2 %v125_v62  ;;  %262 = vmatpush.msra.mxu3 %v126_v63  ;;  %v93_v31 = vld [vmem:[#allocation2 + $0x118] sm:$0xff]  ;;  %v86_v32 = vld [vmem:[#allocation2 + $0xe0] sm:$0xff]  ;;  %v87_v33 = vld [vmem:[#allocation2 + $0xe8] sm:$0xff] }
  0x2c   :  { %267 = vmatpush.msrb.mxu0 %v118_v0  ;;  %287 = vmatpush.msrb.mxu1 %v119_v1  ;;  %v88_v34 = vld [vmem:[#allocation2 + $0xf0] sm:$0xff]  ;;  %v89_v35 = vld [vmem:[#allocation2 + $0xf8] sm:$0xff]  ;;  %v82_v36 = vld [vmem:[#allocation2 + $0xc0] sm:$0xff] }
  0x2d   :  { %307 = vmatpush.msrb.mxu2 %v120_v2  ;;  %327 = vmatpush.msrb.mxu3 %v121_v3  ;;  %v83_v37 = vld [vmem:[#allocation2 + $0xc8] sm:$0xff]  ;;  %v84_v38 = vld [vmem:[#allocation2 + $0xd0] sm:$0xff]  ;;  %v85_v39 = vld [vmem:[#allocation2 + $0xd8] sm:$0xff] }
  0x2e   :  { %268 = vmatpush.msrb.mxu0 %v114_v4  ;;  %288 = vmatpush.msrb.mxu1 %v115_v5  ;;  %v78_v40 = vld [vmem:[#allocation2 + $0xa0] sm:$0xff]  ;;  %v79_v41 = vld [vmem:[#allocation2 + $0xa8] sm:$0xff]  ;;  %v80_v42 = vld [vmem:[#allocation2 + $0xb0] sm:$0xff] }
  0x2f   :  { %308 = vmatpush.msrb.mxu2 %v116_v6  ;;  %328 = vmatpush.msrb.mxu3 %v117_v7  ;;  %v81_v43 = vld [vmem:[#allocation2 + $0xb8] sm:$0xff]  ;;  %v74_v44 = vld [vmem:[#allocation2 + $0x80] sm:$0xff]  ;;  %v75_v45 = vld [vmem:[#allocation2 + $0x88] sm:$0xff] }
  0x30   :  { %269 = vmatpush.msrb.mxu0 %v110_v8  ;;  %289 = vmatpush.msrb.mxu1 %v111_v9  ;;  %v76_v46 = vld [vmem:[#allocation2 + $0x90] sm:$0xff]  ;;  %v77_v47 = vld [vmem:[#allocation2 + $0x98] sm:$0xff]  ;;  %v122_v48 = vld [vmem:[%s527_s1] sm:$0xff] }
  0x31   :  { %309 = vmatpush.msrb.mxu2 %v112_v10  ;;  %329 = vmatpush.msrb.mxu3 %v113_v11  ;;  %v70_v49 = vld [vmem:[#allocation2 + $0x60] sm:$0xff]  ;;  %v71_v50 = vld [vmem:[#allocation2 + $0x68] sm:$0xff]  ;;  %v72_v51 = vld [vmem:[#allocation2 + $0x70] sm:$0xff] }
  0x32   :  { %270 = vmatpush.msrb.mxu0 %v106_v12  ;;  %290 = vmatpush.msrb.mxu1 %v107_v13  ;;  %v73_v52 = vld [vmem:[#allocation2 + $0x78] sm:$0xff]  ;;  %v66_v53 = vld [vmem:[#allocation2 + $0x40] sm:$0xff]  ;;  %v67_v54 = vld [vmem:[#allocation2 + $0x48] sm:$0xff] }
  0x33   :  { %310 = vmatpush.msrb.mxu2 %v108_v14  ;;  %330 = vmatpush.msrb.mxu3 %v109_v15  ;;  %v68_v55 = vld [vmem:[#allocation2 + $0x50] sm:$0xff]  ;;  %v69_v56 = vld [vmem:[#allocation2 + $0x58] sm:$0xff]  ;;  %v62_v57 = vld [vmem:[#allocation2 + $0x20] sm:$0xff] }
  0x34   :  { %271 = vmatpush.msrb.mxu0 %v102_v16  ;;  %291 = vmatpush.msrb.mxu1 %v103_v17  ;;  %v63_v58 = vld [vmem:[#allocation2 + $0x28] sm:$0xff]  ;;  %v64_v59 = vld [vmem:[#allocation2 + $0x30] sm:$0xff]  ;;  %v65_v60 = vld [vmem:[#allocation2 + $0x38] sm:$0xff] }
  0x35   :  { %311 = vmatpush.msrb.mxu2 %v104_v18  ;;  %331 = vmatpush.msrb.mxu3 %v105_v19  ;;  %v58_v61 = vld [vmem:[#allocation2] sm:$0xff]  ;;  %v59_v62 = vld [vmem:[#allocation2 + $0x8] sm:$0xff]  ;;  %v60_v63 = vld [vmem:[#allocation2 + $0x10] sm:$0xff] }
  0x36   :  { %272 = vmatpush.msrb.mxu0 %v98_v20  ;;  %292 = vmatpush.msrb.mxu1 %v99_v21  ;;  %v61_v0 = vld [vmem:[#allocation2 + $0x18] sm:$0xff]  ;;  %v57_v1 = vld [vmem:[%s526_s0] sm:$0xff] }
  0x37   :  { %312 = vmatpush.msrb.mxu2 %v100_v22  ;;  %332 = vmatpush.msrb.mxu3 %v101_v23  ;;  %v347_v4 = vld [vmem:[%s531_s5] sm:$0xf] }
  0x38   :  { %273 = vmatpush.msrb.mxu0 %v94_v24  ;;  %293 = vmatpush.msrb.mxu1 %v95_v25  ;;  %v349_v7 = vperm.slane %v347_v4, 0  ;;  %v350_v8 = vperm.slane %v347_v4, 1  ;;  %v351_v17 = vperm.slane %v347_v4, 2  ;;  %v352_v18 = vperm.slane %v347_v4, 3 }
  0x39   :  { %313 = vmatpush.msrb.mxu2 %v96_v26  ;;  %333 = vmatpush.msrb.mxu3 %v97_v27 }
  0x3a   :  { %274 = vmatpush.msrb.mxu0 %v90_v28  ;;  %294 = vmatpush.msrb.mxu1 %v91_v29 }
  0x3b   :  { %314 = vmatpush.msrb.mxu2 %v92_v30  ;;  %334 = vmatpush.msrb.mxu3 %v93_v31  ;;  %v374_v31 = vld [vmem:[%s528_s2] sm:$0xff] }
  0x3c   :  { %275 = vmatpush.msrb.mxu0 %v86_v32  ;;  %295 = vmatpush.msrb.mxu1 %v87_v33 }
  0x3d   :  { %315 = vmatpush.msrb.mxu2 %v88_v34  ;;  %335 = vmatpush.msrb.mxu3 %v89_v35 }
  0x3e   :  { %276 = vmatpush.msrb.mxu0 %v82_v36  ;;  %296 = vmatpush.msrb.mxu1 %v83_v37 }
  0x3f   :  { %316 = vmatpush.msrb.mxu2 %v84_v38  ;;  %336 = vmatpush.msrb.mxu3 %v85_v39 }
  0x40   :  { %277 = vmatpush.msrb.mxu0 %v78_v40  ;;  %297 = vmatpush.msrb.mxu1 %v79_v41 }
  0x41   :  { %317 = vmatpush.msrb.mxu2 %v80_v42  ;;  %337 = vmatpush.msrb.mxu3 %v81_v43 }
  0x42   :  { %278 = vmatpush.msrb.mxu0 %v74_v44  ;;  %298 = vmatpush.msrb.mxu1 %v75_v45 }
  0x43   :  { %318 = vmatpush.msrb.mxu2 %v76_v46  ;;  %338 = vmatpush.msrb.mxu3 %v77_v47 }
  0x44   :  { %203 = vmatmul.f32.vlgmr.msra.gmra.mxu0 %v122_v48  ;;  %223 = vmatmul.f32.vlgmr.msra.gmra.mxu1 %v122_v48 }
  0x45   :  { %243 = vmatmul.f32.vlgmr.msra.gmra.mxu2 %v122_v48  ;;  %263 = vmatmul.f32.vlgmr.msra.gmra.mxu3 %v122_v48 }
  0x46   :  { %279 = vmatpush.msrb.mxu0 %v70_v49  ;;  %299 = vmatpush.msrb.mxu1 %v71_v50 }
  0x47   :  { %319 = vmatpush.msrb.mxu2 %v72_v51  ;;  %339 = vmatpush.msrb.mxu3 %v73_v52 }
  0x48   :  { %280 = vmatpush.msrb.mxu0 %v66_v53  ;;  %300 = vmatpush.msrb.mxu1 %v67_v54 }
  0x49   :  { %320 = vmatpush.msrb.mxu2 %v68_v55  ;;  %340 = vmatpush.msrb.mxu3 %v69_v56 }
  0x4a   :  { %281 = vmatpush.msrb.mxu0 %v62_v57  ;;  %301 = vmatpush.msrb.mxu1 %v63_v58 }
  0x4b   :  { %321 = vmatpush.msrb.mxu2 %v64_v59  ;;  %341 = vmatpush.msrb.mxu3 %v65_v60 }
  0x4c   :  { %282 = vmatpush.msrb.mxu0 %v58_v61  ;;  %302 = vmatpush.msrb.mxu1 %v59_v62 }
  0x4d   :  { %322 = vmatpush.msrb.mxu2 %v60_v63  ;;  %342 = vmatpush.msrb.mxu3 %v61_v0 }
  0x4e   :  { %283 = vmatmul.f32.vlgmr.msrb.gmra.mxu0 %v57_v1  ;;  %303 = vmatmul.f32.vlgmr.msrb.gmra.mxu1 %v57_v1 }
  0x4f   :  { %323 = vmatmul.f32.vlgmr.msrb.gmra.mxu2 %v57_v1  ;;  %343 = vmatmul.f32.vlgmr.msrb.gmra.mxu3 %v57_v1 }
  0xc1   :  { %v204_v2 = vpop.f32.mrf.mxu0  ;;  %v224_v3 = vpop.f32.mrf.mxu1 }
  0xc8   :  { %v244_v5 = vpop.f32.mrf.mxu2  ;;  %v264_v6 = vpop.f32.mrf.mxu3 }
  0xcb   :  { %v284_v9 = vpop.f32.mrf.mxu0  ;;  %v304_v10 = vpop.f32.mrf.mxu1 }
  0xcc   :  { %v285_v11 = vadd.f32 %v284_v9, %v204_v2  ;;  %v305_v12 = vadd.f32 %v304_v10, %v224_v3 }
  0xce   :  { %v357_v13 = vadd.f32 %v349_v7, %v285_v11  ;;  %v358_v14 = vadd.f32 %v350_v8, %v305_v12 }
  0xd0   :  { %v361_v15 = vmul.f32 0.5, %v357_v13  ;;  %v365_v16 = vmul.f32 0.5, %v358_v14 }
  0xd2   :  { %396 = vtanh.f32 %v361_v15  ;;  %v324_v19 = vpop.f32.mrf.mxu2  ;;  %v344_v20 = vpop.f32.mrf.mxu3 }
  0xd3   :  { %398 = vtanh.f32 %v365_v16  ;;  %v325_v21 = vadd.f32 %v324_v19, %v244_v5  ;;  %v345_v22 = vadd.f32 %v344_v20, %v264_v6 }
  0xd5   :  { %v359_v23 = vadd.f32 %v351_v17, %v325_v21  ;;  %v360_v24 = vadd.f32 %v352_v18, %v345_v22 }
  0xd7   :  { %400 = vtanh.f32 %v359_v23  ;;  %v369_v25 = vmul.f32 0.5, %v360_v24 }
  0xd8   :  { %v397_v26 = vpop.eup %396 }
  0xd9   :  { %v399_v27 = vpop.eup %398  ;;  %v363_v28 = vmul.f32 0.5, %v397_v26  ;;  %402 = vtanh.f32 %v369_v25 }
  0xda   :  { %v367_v29 = vmul.f32 0.5, %v399_v27 }
  0xdb   :  { %v364_v30 = vadd.f32 0.5, %v363_v28 }
  0xdc   :  { %v368_v32 = vadd.f32 0.5, %v367_v29 }
  0xdd   :  { %v401_v33 = vpop.eup %400 }
  0xde   :  { %v375_v34 = vmul.f32 %v374_v31, %v368_v32  ;;  %v376_v35 = vmul.f32 %v401_v33, %v364_v30 }
  0xdf   :  { %v403_v36 = vpop.eup %402 }
  0xe0   :  { %v377_v37 = vadd.f32 %v376_v35, %v375_v34  ;;  %v371_v38 = vmul.f32 0.5, %v403_v36 }
  0xe2   :  { %404 = vtanh.f32 %v377_v37  ;;  %381 = vst [vmem:[%s533_s7] sm:$0xff] %v377_v37  ;;  %v372_v39 = vadd.f32 0.5, %v371_v38 }
  0xe8   :  { %v405_v40 = vpop.eup %404 }
  0xe9   :  { %v379_v41 = vmul.f32 %v405_v40, %v372_v39 }
  0xeb   :  { %380 = vst [vmem:[%s532_s6] sm:$0xff] %v379_v41 }
  0xec   :  { %390 = vsyncpa [#allocation3], 1 }
  0xed   :  { %391 = vsyncpa [#allocation5], 1 }

</bundles_post_ra>
